<compile_context>
chip_gen: v7x
topology: tpu7x:2x2x1
jax: 0.10.0
libtpu: 0.0.40
codegen_flags: <defaults>
</compile_context>

<pallas_src>
import functools

import jax
import jax.numpy as jnp
from jax.experimental import pallas as pl
from jax.experimental.pallas import tpu as pltpu


def cnn_kernel(x1_ref, w1_ref, b1_ref, w2_ref, b2_ref, w3_ref, b3_ref, o_ref,
               *, seq_len, chunk_rows, per_tap_layer3):
    """One grid step: (tile_rows, 16) im2col LHS -> (tile_rows, n_out)."""
    tile_rows = x1_ref.shape[0]
    n_chunks = tile_rows // chunk_rows

    # ---- hoisted once per grid step -------------------------------------
    # chunk_rows is a multiple of seq_len and every chunk starts on a sequence
    # boundary, so one (chunk_rows, 1) boundary-mask pattern serves all chunks.
    pos = jax.lax.broadcasted_iota(jnp.int32, (chunk_rows, 1), 0) % seq_len
    mask_prev = (pos > 0).astype(jnp.float32)            # row has a t-1 neighbor
    mask_next = (pos < seq_len - 1).astype(jnp.float32)  # row has a t+1 neighbor

    w1 = w1_ref[...]
    b1 = b1_ref[...]
    w2 = w2_ref[...]
    b2 = b2_ref[...]
    b3 = b3_ref[...]
    if per_tap_layer3:
        w3_taps = (w3_ref[0], w3_ref[1], w3_ref[2])       # each (128, n_out) bf16
    else:
        w3 = w3_ref[...]                                   # (384, n_out) bf16

    # Row shifts via the XLU (pltpu.roll needs non-negative shifts; rolls/masks
    # stay f32 -- safe on v5e's VALU and avoids packed-sublane-rotate lowering).
    def shift_prev(h):   # out[t] = h[t-1], zeroed at sequence starts
        return pltpu.roll(h, 1, axis=0) * mask_prev

    def shift_next(h):   # out[t] = h[t+1], zeroed at sequence ends
        return pltpu.roll(h, chunk_rows - 1, axis=0) * mask_next

    def fused_tap_lhs(h):
        # [h[t-1] | h[t] | h[t+1]]; pieces cast to bf16 BEFORE the lane concat
        # so the big (chunk, 3*C) copy / live range is bf16, not f32.
        return jnp.concatenate(
            [shift_prev(h).astype(jnp.bfloat16),
             h.astype(jnp.bfloat16),
             shift_next(h).astype(jnp.bfloat16)], axis=1)

    def run_chunk(start):
        x1 = x1_ref[pl.ds(start, chunk_rows), :]          # (chunk, 16) bf16
        # Layer 1: im2col was built host-side -> one K=16 matmul.
        h1 = jnp.dot(x1, w1, preferred_element_type=jnp.float32) + b1
        h1 = jnp.maximum(h1, 0.0)                          # (chunk, 64)  f32
        # Layer 2: fused 3-tap matmul, K=192.
        h2 = jnp.dot(fused_tap_lhs(h1), w2,
                     preferred_element_type=jnp.float32) + b2
        h2 = jnp.maximum(h2, 0.0)                          # (chunk, 128) f32
        # Layer 3.
        if per_tap_layer3:
            # v5e: MXU K-tile is 128, so fused K=384 is 3 passes anyway;
            # per-tap dots delete the (chunk,128) rolls/masks/concat and only
            # shift the tiny (chunk, n_out) partials.
            h2b = h2.astype(jnp.bfloat16)
            p0 = jnp.dot(h2b, w3_taps[0], preferred_element_type=jnp.float32)
            p1 = jnp.dot(h2b, w3_taps[1], preferred_element_type=jnp.float32)
            p2 = jnp.dot(h2b, w3_taps[2], preferred_element_type=jnp.float32)
            h3 = p1 + shift_prev(p0) + shift_next(p2) + b3
        else:
            # v6e/v7x: fused K=384 -> 2 passes on the 256-deep MXU.
            h3 = jnp.dot(fused_tap_lhs(h2), w3,
                         preferred_element_type=jnp.float32) + b3
        o_ref[pl.ds(start, chunk_rows), :] = h3.astype(o_ref.dtype)

    if n_chunks == 1:
        run_chunk(0)
    else:
        # Always fully unrolled so the LLO scheduler sees the whole body; the
        # chunking only exists to bound the (chunk, 128/384) live ranges.
        def body(c, carry):
            run_chunk(pl.multiple_of(c * chunk_rows, 8))
            return carry
        jax.lax.fori_loop(0, n_chunks, body, 0, unroll=True)


def _pick_tiling(batch, seq_len, *, target_tile_rows=2048, target_chunk_rows=512,
                 min_tiles=4):
    """Pick (tile_rows, chunk_rows): multiples of seq_len, tile divides B*L."""
    rows_total = batch * seq_len
    divisors = [d for d in range(1, batch + 1) if batch % d == 0]
    fitting = [d for d in divisors if d * seq_len <= target_tile_rows] or [1]
    # Prefer >= min_tiles grid tiles (v7x: 2 TCs want >= 4 for load balance),
    # then >= 2, then whatever fits.
    bpt = max(fitting)
    for want in (min_tiles, 2, 1):
        cand = [d for d in fitting if batch // d >= want]
        if cand:
            bpt = max(cand)
            break
    tile_rows = bpt * seq_len
    # (8,128) rule: second-to-last block dim must be a multiple of 8 unless it
    # spans the full (flattened) array.
    if tile_rows % 8 != 0 and tile_rows != rows_total:
        bpt, tile_rows = batch, rows_total
    # Inner chunk: largest seq-aligned, 8-aligned divisor of the tile.
    chunk_divs = [d for d in range(1, bpt + 1)
                  if bpt % d == 0 and d * seq_len <= target_chunk_rows
                  and (d * seq_len) % 8 == 0]
    chunk_rows = (max(chunk_divs) * seq_len) if chunk_divs else tile_rows
    return tile_rows, chunk_rows


def robust_cnn_pallas(x, params, *, target_tile_rows=2048, target_chunk_rows=512,
                      per_tap_layer3=None, lane_dense_output=None):
    """x: (B, L, 3) float32 -> (B, L, 3) float32 (matches RobustCNNMethod)."""
    w1, b1, w2, b2, w3, b3 = params        # w: (K=3, Cin, Cout);  b: (1, Cout)
    B, L, Cin = x.shape
    C1, C2, Cout = w1.shape[-1], w2.shape[-1], w3.shape[-1]
    rows_total = B * L

    kind = ""
    try:
        kind = jax.devices()[0].device_kind.lower()
    except Exception:
        pass
    if per_tap_layer3 is None:
        per_tap_layer3 = "v5" in kind              # 128-deep MXU generations
    if lane_dense_output is None:
        lane_dense_output = "v7" in kind           # 3.2 TB/s HBM absorbs the pad

    n_out = 128 if lane_dense_output else Cout

    # ---- host-side im2col for layer 1 (9 taps, zero-padded to 16 lanes) ----
    K1P = 16
    x_pad = jnp.pad(x, ((0, 0), (1, 1), (0, 0)))
    lhs1 = jnp.concatenate(
        [x_pad[:, :-2, :], x_pad[:, 1:-1, :], x_pad[:, 2:, :]], axis=-1)
    lhs1 = lhs1.reshape(rows_total, 3 * Cin)
    lhs1 = jnp.pad(lhs1, ((0, 0), (0, K1P - 3 * Cin))).astype(jnp.bfloat16)

    # ---- host-side tap fusion of weights (bf16 for the MXU) ----
    w1p = jnp.pad(w1.reshape(3 * Cin, C1),
                  ((0, K1P - 3 * Cin), (0, 0))).astype(jnp.bfloat16)   # (16, 64)
    w2f = w2.reshape(3 * C1, C2).astype(jnp.bfloat16)                  # (192, 128)
    if per_tap_layer3:
        w3k = w3.astype(jnp.bfloat16)                                  # (3, 128, Cout)
        if lane_dense_output:
            w3k = jnp.pad(w3k, ((0, 0), (0, 0), (0, n_out - Cout)))
    else:
        w3k = w3.reshape(3 * C2, Cout)
        if lane_dense_output:
            w3k = jnp.pad(w3k, ((0, 0), (0, n_out - Cout)))
        w3k = w3k.astype(jnp.bfloat16)                                 # (384, n_out)
    b1f = b1.astype(jnp.float32)
    b2f = b2.astype(jnp.float32)
    b3f = b3.astype(jnp.float32)
    if lane_dense_output:
        b3f = jnp.pad(b3f, ((0, 0), (0, n_out - Cout)))

    tile_rows, chunk_rows = _pick_tiling(
        B, L, target_tile_rows=target_tile_rows,
        target_chunk_rows=target_chunk_rows)
    grid = (rows_total // tile_rows,)

    kernel = functools.partial(cnn_kernel, seq_len=L, chunk_rows=chunk_rows,
                               per_tap_layer3=per_tap_layer3)

    def const_spec(a):  # constant operand: same (whole-array) block every step
        return pl.BlockSpec(a.shape, lambda i, _nd=a.ndim: (0,) * _nd)

    flops = 2 * rows_total * (3 * Cin * C1 + 3 * C1 * C2 + 3 * C2 * Cout)
    bytes_accessed = (rows_total * (K1P * 2 + n_out * 4)
                      + (K1P * C1 + 3 * C1 * C2 + 3 * C2 * n_out) * 2
                      + (C1 + C2 + n_out) * 4)

    out_flat = pl.pallas_call(
        kernel,
        out_shape=jax.ShapeDtypeStruct((rows_total, n_out), x.dtype),
        grid=grid,
        in_specs=[
            pl.BlockSpec((tile_rows, K1P), lambda i: (i, 0)),
            const_spec(w1p), const_spec(b1f),
            const_spec(w2f), const_spec(b2f),
            const_spec(w3k), const_spec(b3f),
        ],
        out_specs=pl.BlockSpec((tile_rows, n_out), lambda i: (i, 0)),
        compiler_params=pltpu.CompilerParams(
            dimension_semantics=("parallel",),
            vmem_limit_bytes=32 * 1024 * 1024,   # safe on v7x's 64 MiB VMEM
        ),
        cost_estimate=pl.CostEstimate(
            flops=int(flops), transcendentals=0,
            bytes_accessed=int(bytes_accessed)),
    )(lhs1, w1p, b1f, w2f, b2f, w3k, b3f)

    out = out_flat[:, :Cout] if lane_dense_output else out_flat
    return out.reshape(B, L, Cout)


def init_params(key):
    """Deterministic synthetic parameters.

    Weights stored as (K, Cin, Cout); biases as (1, Cout).
    (PyTorch Conv1d weight (Cout, Cin, K) == transpose(w, (2, 1, 0)).)
    """
    ks = jax.random.split(key, 6)
    w1 = 0.1 * jax.random.normal(ks[0], (3, 3, 64), jnp.float32)
    b1 = 0.1 * jax.random.normal(ks[1], (1, 64), jnp.float32)
    w2 = 0.1 * jax.random.normal(ks[2], (3, 64, 128), jnp.float32)
    b2 = 0.1 * jax.random.normal(ks[3], (1, 128), jnp.float32)
    w3 = 0.1 * jax.random.normal(ks[4], (3, 128, 3), jnp.float32)
    b3 = 0.1 * jax.random.normal(ks[5], (1, 3), jnp.float32)
    return (w1, b1, w2, b2, w3, b3)


def ref_forward(x, params):
    """Pure-JAX f32 reference mirroring the PyTorch forward (NCL convs)."""
    w1, b1, w2, b2, w3, b3 = params

    def conv(h, w, b):  # h: (B, C, L)
        wt = jnp.transpose(w, (2, 1, 0))  # (Cout, Cin, K)
        y = jax.lax.conv_general_dilated(
            h, wt, window_strides=(1,), padding=((1, 1),),
            dimension_numbers=("NCH", "OIH", "NCH"))
        return y + b.reshape(1, -1, 1)

    h = jnp.transpose(x, (0, 2, 1))          # (B, 3, L)
    h = jax.nn.relu(conv(h, w1, b1))
    h = jax.nn.relu(conv(h, w2, b2))
    h = conv(h, w3, b3)
    return jnp.transpose(h, (0, 2, 1))       # (B, L, 3)


if __name__ == "__main__":
    key = jax.random.PRNGKey(0)
    kx, kp = jax.random.split(key)
    B, L, C = 2, 16, 3
    x = jax.random.normal(kx, (B, L, C), jnp.float32)
    params = init_params(kp)

    out = jax.block_until_ready(robust_cnn_pallas(x, params))
    ref = jax.block_until_ready(ref_forward(x, params))

    assert out.shape == (B, L, C)
    # Kernel runs its matmuls with bf16 operands (f32 accumulation), so allow
    # a loosened tolerance vs. the pure-f32 reference.
    max_err = float(jnp.max(jnp.abs(out - ref)))
    assert max_err < 5e-2, max_err
    print("KERNEL_OK")
</pallas_src>

<mosaic_0001>
module attributes {stable_mosaic.version = 11 : i64} {
  func.func @cnn_kernel(%arg0: i32, %arg1: memref<16x16xbf16, #tpu.memory_space<vmem>>, %arg2: memref<16x64xbf16, #tpu.memory_space<vmem>>, %arg3: memref<1x64xf32, #tpu.memory_space<vmem>>, %arg4: memref<192x128xbf16, #tpu.memory_space<vmem>>, %arg5: memref<1x128xf32, #tpu.memory_space<vmem>>, %arg6: memref<384x3xbf16, #tpu.memory_space<vmem>>, %arg7: memref<1x3xf32, #tpu.memory_space<vmem>>, %arg8: memref<16x3xf32, #tpu.memory_space<vmem>>) attributes {dimension_semantics = [#tpu.dimension_semantics<parallel>], iteration_bounds = array<i64: 2>, scalar_prefetch = 0 : i64, scratch_operands = 0 : i64, tpu.core_type = #tpu.core_type<tc>, window_params = [{transform_indices = @transform_0, window_bounds = array<i64: 16, 16>}, {pipeline_mode = #tpu.pipeline_mode<synchronous>, transform_indices = @transform_1, window_bounds = array<i64: 16, 64>}, {pipeline_mode = #tpu.pipeline_mode<synchronous>, transform_indices = @transform_2, window_bounds = array<i64: 1, 64>}, {pipeline_mode = #tpu.pipeline_mode<synchronous>, transform_indices = @transform_3, window_bounds = array<i64: 192, 128>}, {pipeline_mode = #tpu.pipeline_mode<synchronous>, transform_indices = @transform_4, window_bounds = array<i64: 1, 128>}, {pipeline_mode = #tpu.pipeline_mode<synchronous>, transform_indices = @transform_5, window_bounds = array<i64: 384, 3>}, {pipeline_mode = #tpu.pipeline_mode<synchronous>, transform_indices = @transform_6, window_bounds = array<i64: 1, 3>}, {transform_indices = @transform_7, window_bounds = array<i64: 16, 3>}]} {
    %0 = tpu.iota {dimensions = array<i32: 0>} : vector<16x1xi32>
    %c16_i32 = arith.constant 16 : i32
    %c0_i32 = arith.constant 0 : i32
    %1 = arith.cmpi eq, %c16_i32, %c0_i32 : i32
    %c1_i32 = arith.constant 1 : i32
    %2 = arith.select %1, %c1_i32, %c16_i32 : i32
    %3 = vector.broadcast %2 : i32 to vector<16x1xi32>
    %4 = arith.remsi %0, %3 : vector<16x1xi32>
    %c0_i32_0 = arith.constant 0 : i32
    %5 = vector.broadcast %c0_i32_0 : i32 to vector<16x1xi32>
    %6 = arith.cmpi ne, %4, %5 : vector<16x1xi32>
    %c0_i32_1 = arith.constant 0 : i32
    %7 = vector.broadcast %c0_i32_1 : i32 to vector<16x1xi32>
    %8 = arith.cmpi slt, %4, %7 : vector<16x1xi32>
    %c0_i32_2 = arith.constant 0 : i32
    %9 = arith.cmpi slt, %2, %c0_i32_2 : i32
    %10 = vector.broadcast %9 : i1 to vector<16x1xi1>
    %11 = vector.broadcast %10 : vector<16x1xi1> to vector<16x1xi1>
    %12 = arith.xori %8, %11 : vector<16x1xi1>
    %13 = arith.andi %12, %6 : vector<16x1xi1>
    %14 = vector.broadcast %2 : i32 to vector<16x1xi32>
    %15 = arith.addi %4, %14 : vector<16x1xi32>
    %16 = arith.select %13, %15, %4 : vector<16x1xi1>, vector<16x1xi32>
    %c0_i32_3 = arith.constant 0 : i32
    %17 = vector.broadcast %c0_i32_3 : i32 to vector<16x1xi32>
    %18 = arith.cmpi sgt, %16, %17 : vector<16x1xi32>
    %19 = arith.extui %18 : vector<16x1xi1> to vector<16x1xi32>
    %20 = arith.sitofp %19 : vector<16x1xi32> to vector<16x1xf32>
    %c15_i32 = arith.constant 15 : i32
    %21 = vector.broadcast %c15_i32 : i32 to vector<16x1xi32>
    %22 = arith.cmpi slt, %16, %21 : vector<16x1xi32>
    %23 = arith.extui %22 : vector<16x1xi1> to vector<16x1xi32>
    %24 = arith.sitofp %23 : vector<16x1xi32> to vector<16x1xf32>
    %c0 = arith.constant 0 : index
    %c0_4 = arith.constant 0 : index
    %25 = vector.load %arg2[%c0, %c0_4] : memref<16x64xbf16, #tpu.memory_space<vmem>>, vector<16x64xbf16>
    %c0_5 = arith.constant 0 : index
    %c0_6 = arith.constant 0 : index
    %26 = vector.load %arg3[%c0_5, %c0_6] : memref<1x64xf32, #tpu.memory_space<vmem>>, vector<1x64xf32>
    %c0_7 = arith.constant 0 : index
    %c0_8 = arith.constant 0 : index
    %27 = vector.load %arg4[%c0_7, %c0_8] : memref<192x128xbf16, #tpu.memory_space<vmem>>, vector<192x128xbf16>
    %c0_9 = arith.constant 0 : index
    %c0_10 = arith.constant 0 : index
    %28 = vector.load %arg5[%c0_9, %c0_10] : memref<1x128xf32, #tpu.memory_space<vmem>>, vector<1x128xf32>
    %c0_11 = arith.constant 0 : index
    %c0_12 = arith.constant 0 : index
    %29 = vector.load %arg7[%c0_11, %c0_12] : memref<1x3xf32, #tpu.memory_space<vmem>>, vector<1x3xf32>
    %c0_13 = arith.constant 0 : index
    %c0_14 = arith.constant 0 : index
    %30 = vector.load %arg6[%c0_13, %c0_14] : memref<384x3xbf16, #tpu.memory_space<vmem>>, vector<384x3xbf16>
    %c0_15 = arith.constant 0 : index
    %c0_16 = arith.constant 0 : index
    %31 = vector.load %arg1[%c0_15, %c0_16] : memref<16x16xbf16, #tpu.memory_space<vmem>>, vector<16x16xbf16>
    %cst = arith.constant dense<0.000000e+00> : vector<16x64xf32>
    %32 = tpu.matmul %31, %25, %cst {dimension_numbers = #tpu.dot_dimension_numbers<[1], [0], [0], [1], [0, 0, 1, 1], [], []>} : vector<16x16xbf16>, vector<16x64xbf16>, vector<16x64xf32> -> vector<16x64xf32>
    %33 = vector.broadcast %26 : vector<1x64xf32> to vector<16x64xf32>
    %34 = arith.addf %32, %33 : vector<16x64xf32>
    %cst_17 = arith.constant 0.000000e+00 : f32
    %35 = vector.broadcast %cst_17 : f32 to vector<16x64xf32>
    %36 = arith.maximumf %34, %35 : vector<16x64xf32>
    %c1_i32_18 = arith.constant 1 : i32
    %37 = tpu.dynamic_rotate %36 by %c1_i32_18 dim 0 : vector<16x64xf32>, i32 -> vector<16x64xf32>
    %38 = vector.broadcast %20 : vector<16x1xf32> to vector<16x64xf32>
    %39 = arith.mulf %37, %38 : vector<16x64xf32>
    %40 = arith.truncf %39 : vector<16x64xf32> to vector<16x64xbf16>
    %41 = arith.truncf %36 : vector<16x64xf32> to vector<16x64xbf16>
    %c15_i32_19 = arith.constant 15 : i32
    %42 = tpu.dynamic_rotate %36 by %c15_i32_19 dim 0 : vector<16x64xf32>, i32 -> vector<16x64xf32>
    %43 = vector.broadcast %24 : vector<16x1xf32> to vector<16x64xf32>
    %44 = arith.mulf %42, %43 : vector<16x64xf32>
    %45 = arith.truncf %44 : vector<16x64xf32> to vector<16x64xbf16>
    %46 = tpu.concatenate %40, %41, %45 in 1 : vector<16x64xbf16>, vector<16x64xbf16>, vector<16x64xbf16> -> vector<16x192xbf16>
    %cst_20 = arith.constant dense<0.000000e+00> : vector<16x128xf32>
    %47 = tpu.matmul %46, %27, %cst_20 {dimension_numbers = #tpu.dot_dimension_numbers<[1], [0], [0], [1], [0, 0, 1, 1], [], []>} : vector<16x192xbf16>, vector<192x128xbf16>, vector<16x128xf32> -> vector<16x128xf32>
    %48 = vector.broadcast %28 : vector<1x128xf32> to vector<16x128xf32>
    %49 = arith.addf %47, %48 : vector<16x128xf32>
    %cst_21 = arith.constant 0.000000e+00 : f32
    %50 = vector.broadcast %cst_21 : f32 to vector<16x128xf32>
    %51 = arith.maximumf %49, %50 : vector<16x128xf32>
    %c1_i32_22 = arith.constant 1 : i32
    %52 = tpu.dynamic_rotate %51 by %c1_i32_22 dim 0 : vector<16x128xf32>, i32 -> vector<16x128xf32>
    %53 = vector.broadcast %20 : vector<16x1xf32> to vector<16x128xf32>
    %54 = arith.mulf %52, %53 : vector<16x128xf32>
    %55 = arith.truncf %54 : vector<16x128xf32> to vector<16x128xbf16>
    %56 = arith.truncf %51 : vector<16x128xf32> to vector<16x128xbf16>
    %c15_i32_23 = arith.constant 15 : i32
    %57 = tpu.dynamic_rotate %51 by %c15_i32_23 dim 0 : vector<16x128xf32>, i32 -> vector<16x128xf32>
    %58 = vector.broadcast %24 : vector<16x1xf32> to vector<16x128xf32>
    %59 = arith.mulf %57, %58 : vector<16x128xf32>
    %60 = arith.truncf %59 : vector<16x128xf32> to vector<16x128xbf16>
    %61 = tpu.concatenate %55, %56, %60 in 1 : vector<16x128xbf16>, vector<16x128xbf16>, vector<16x128xbf16> -> vector<16x384xbf16>
    %cst_24 = arith.constant dense<0.000000e+00> : vector<16x3xf32>
    %62 = tpu.matmul %61, %30, %cst_24 {dimension_numbers = #tpu.dot_dimension_numbers<[1], [0], [0], [1], [0, 0, 1, 1], [], []>} : vector<16x384xbf16>, vector<384x3xbf16>, vector<16x3xf32> -> vector<16x3xf32>
    %63 = vector.broadcast %29 : vector<1x3xf32> to vector<16x3xf32>
    %64 = arith.addf %62, %63 : vector<16x3xf32>
    %c0_25 = arith.constant 0 : index
    %c0_26 = arith.constant 0 : index
    %65 = vector.load %arg8[%c0_25, %c0_26] : memref<16x3xf32, #tpu.memory_space<vmem>>, vector<16x3xf32>
    tpu.vector_store %arg8[%c0_25, %c0_26], %64 {strides = array<i32>} : memref<16x3xf32, #tpu.memory_space<vmem>>, vector<16x3xf32>,
    return
  }
  func.func @transform_0(%arg0: i32) -> (i32, i32) {
    %c0_i32 = arith.constant 0 : i32
    %c0_i32_0 = arith.constant 0 : i32
    return %arg0, %c0_i32 : i32, i32
  }
  func.func @transform_1(%arg0: i32) -> (i32, i32) {
    %c0_i32 = arith.constant 0 : i32
    %c0_i32_0 = arith.constant 0 : i32
    %c0_i32_1 = arith.constant 0 : i32
    return %c0_i32, %c0_i32_0 : i32, i32
  }
  func.func @transform_2(%arg0: i32) -> (i32, i32) {
    %c0_i32 = arith.constant 0 : i32
    %c0_i32_0 = arith.constant 0 : i32
    %c0_i32_1 = arith.constant 0 : i32
    return %c0_i32, %c0_i32_0 : i32, i32
  }
  func.func @transform_3(%arg0: i32) -> (i32, i32) {
    %c0_i32 = arith.constant 0 : i32
    %c0_i32_0 = arith.constant 0 : i32
    %c0_i32_1 = arith.constant 0 : i32
    return %c0_i32, %c0_i32_0 : i32, i32
  }
  func.func @transform_4(%arg0: i32) -> (i32, i32) {
    %c0_i32 = arith.constant 0 : i32
    %c0_i32_0 = arith.constant 0 : i32
    %c0_i32_1 = arith.constant 0 : i32
    return %c0_i32, %c0_i32_0 : i32, i32
  }
  func.func @transform_5(%arg0: i32) -> (i32, i32) {
    %c0_i32 = arith.constant 0 : i32
    %c0_i32_0 = arith.constant 0 : i32
    %c0_i32_1 = arith.constant 0 : i32
    return %c0_i32, %c0_i32_0 : i32, i32
  }
  func.func @transform_6(%arg0: i32) -> (i32, i32) {
    %c0_i32 = arith.constant 0 : i32
    %c0_i32_0 = arith.constant 0 : i32
    %c0_i32_1 = arith.constant 0 : i32
    return %c0_i32, %c0_i32_0 : i32, i32
  }
  func.func @transform_7(%arg0: i32) -> (i32, i32) {
    %c0_i32 = arith.constant 0 : i32
    %c0_i32_0 = arith.constant 0 : i32
    return %arg0, %c0_i32 : i32, i32
  }
}

</mosaic_0001>

<bundles_post_ra>
// kernel: tpu_custom_call.1
= control target key start
LH: loop header
LB: loop body
LE: loop exit
PB: predicated region body
PF: predicated region fallthrough
CT: control target
= control target key end

     0   :  { %s1137_s24 = smov 0   ;;  %s1323_s0 = inlined_call_operand.vmem [shape: bf16[32,16], index: 0, kind: input, shape index: {}]   ;;  %s1324_s1 = inlined_call_operand.vmem [shape: bf16[16,64], index: 1, kind: input, shape index: {}]   ;;  %s1325_s2 = inlined_call_operand.vmem [shape: f32[1,64], index: 2, kind: input, shape index: {}]   ;;  %s1326_s3 = inlined_call_operand.vmem [shape: bf16[192,128], index: 3, kind: input, shape index: {}]   ;;  %s1327_s4 = inlined_call_operand.vmem [shape: f32[1,128], index: 4, kind: input, shape index: {}]   ;;  %s1328_s5 = inlined_call_operand.vmem [shape: bf16[384,3], index: 5, kind: input, shape index: {}]   ;;  %s1329_s6 = inlined_call_operand.vmem [shape: f32[1,3], index: 6, kind: input, shape index: {}]   ;;  %s1330_s7 = inlined_call_operand.vmem [shape: f32[32,3], index: 7, kind: output, shape index: {}]  }
   0x1 LB: > { %s920_s25 = sadd.s32 4294967295, %s1091_s24   ;;  %p924_p0 = scmp.ge.s32.totalorder %s1091_s24, 1  ;;  %s1091_s24 = sphi %s1137_s24, %s17_s24  }
   0x2   : > { %p238_p1 = scmp.lt.s32.totalorder %s1091_s24, 3 }
   0x4   : > { %p239_p2 = pnand %p924_p0, %p238_p1 }
   0x5   : > { %v1047_v0 = vld [vmem:[%s1324_s1] sm:$0xff] (!%p239_p2)   ;;  %v1093_v1 = vmov (!%p239_p2), 0.0   ;;  %s925_s28 = sshll.u32 (!%p239_p2), %s920_s25, 1  ;;  %vm1094_vm0 = vmmov (!%p239_p2), 0   ;;  %vm418_vm1 = vcmask (!%p239_p2), 130048   ;;  %v1095_v4 = vmov (!%p239_p2), 0  }
   0x6   : > { %242 = sbr.rel (%p239_p2) target bundleno = 827 (0x33b), region = 48  ;;  %1009 = vmatprep.subr.bf16.mxu1 (!%p239_p2), %v1093_v1  ;;  %1011 = vmatprep.mubr.msk.bf16.mxu1 (!%p239_p2), %vm1094_vm0, %v1093_v1  ;;  %p271_p3 = scmp.lt.s32.totalorder (!%p239_p2), %s925_s28, 3  ;;  %v1049_v3 = vld [vmem:[%s1326_s3] sm:$0xff] (!%p239_p2)   ;;  %v1050_v5 = vld [vmem:[%s1326_s3 + $0x8] sm:$0xff] (!%p239_p2)   ;;  %v1051_v6 = vld [vmem:[%s1326_s3 + $0x10] sm:$0xff] (!%p239_p2)   ;;  %v283_v16 = vlaneseq (!%p239_p2)  ;;  %vm485_vm6 = vcmask (!%p239_p2), 523264  }
   0x7   : > { %1010 = vmatpush3.bf16.msra.mxu1 (!%p239_p2), %v1047_v0  ;;  %v1052_v7 = vld [vmem:[%s1326_s3 + $0x18] sm:$0xff] (!%p239_p2)   ;;  %v1053_v8 = vld [vmem:[%s1326_s3 + $0x20] sm:$0xff] (!%p239_p2)   ;;  %v1054_v9 = vld [vmem:[%s1326_s3 + $0x28] sm:$0xff] (!%p239_p2)   ;;  %s1096_s10 = smov (!%p239_p2), 64   ;;  %vm861_vm7 = vcmask (!%p239_p2), 23552  }
   0x8   : > { %571 = vmatprep.subr.bf16.mxu1 (!%p239_p2), %v1095_v4  ;;  %v1055_v10 = vld [vmem:[%s1326_s3 + $0x30] sm:$0xff] (!%p239_p2)   ;;  %v1056_v11 = vld [vmem:[%s1326_s3 + $0x38] sm:$0xff] (!%p239_p2)   ;;  %v1057_v12 = vld [vmem:[%s1326_s3 + $0x40] sm:$0xff] (!%p239_p2)   ;;  %v1193_v17 = vshrl.u32 (!%p239_p2), %v283_v16, 7 }
   0x9   : > { %v1058_v13 = vld [vmem:[%s1326_s3 + $0x48] sm:$0xff] (!%p239_p2)   ;;  %v1059_v14 = vld [vmem:[%s1326_s3 + $0x50] sm:$0xff] (!%p239_p2)   ;;  %v1060_v15 = vld [vmem:[%s1326_s3 + $0x58] sm:$0xff] (!%p239_p2)  }
   0xa   : > { %v285_v18 = vadd.s32 (!%p239_p2), 8, %v1193_v17  ;;  %v1061_v19 = vld [vmem:[%s1328_s5 + $0x40] sm:$0xff] (!%p239_p2)   ;;  %v1063_v21 = vld [vmem:[%s1328_s5 + $0x48] sm:$0xff] (!%p239_p2)   ;;  %v290_v24 = vand.u32 (!%p239_p2), 15, %v1193_v17  ;;  %v1065_v29 = vld [vmem:[%s1328_s5 + $0x50] sm:$0xff] (!%p239_p2)   ;;  %vm476_vm4 = vcmp.lt.s32.totalorder (!%p239_p2), %v1193_v17, 7 }
   0xb   : > { %v1062_v20 = vld [vmem:[%s1328_s5] sm:$0xff] (!%p239_p2)   ;;  %978 = vmatprep.subr.bf16.mxu0 (!%p239_p2), %v1061_v19  ;;  %v1064_v26 = vld [vmem:[%s1328_s5 + $0x8] sm:$0xff] (!%p239_p2)   ;;  %v1066_v34 = vld [vmem:[%s1328_s5 + $0x10] sm:$0xff] (!%p239_p2)   ;;  %vm467_vm5 = vcmp.lt.s32.totalorder (!%p239_p2), %v1193_v17, 1 }
   0xc   : > { %v931_v22 = vld [vmem:[%s1325_s2] ss:$0 sm:$0xff] (!%p239_p2)  ;;  %v297_v23 = vand.u32 (!%p239_p2), 15, %v285_v18  ;;  %979 = vmatpush3.bf16.msra.mxu0 (!%p239_p2), %v1062_v20  ;;  %vm310_vm3 = vcmp.gt.s32.totalorder (!%p239_p2), %v290_v24, 0  ;;  %v1067_v39 = vld [vmem:[%s1328_s5 + $0x58] sm:$0xff] (!%p239_p2)   ;;  %v1071_v57 = vld [vmem:[%s1328_s5 + $0x68] sm:$0xff] (!%p239_p2)  }
   0xd   : > { %s1332_s28 = smov (!%p271_p3, %s925_s28), 3  ;;  %980 = vmatprep.subr.bf16.mxu0 %v1063_v21  ;;  %v1223_v38 = vsel %vm310_vm3, 1.0, %v1093_v1  ;;  %v1068_v44 = vld [vmem:[%s1328_s5 + $0x18] sm:$0xff]   ;;  %v1069_v49 = vld [vmem:[%s1328_s5 + $0x60] sm:$0xff]   ;;  %v1072_v58 = vld [vmem:[%s1328_s5 + $0x28] sm:$0xff]  }
   0xe   : > { %s926_s29 = sshll.u32 %s1332_s28, 2  ;;  %vm317_vm2 = vcmp.lt.s32.totalorder %v297_v23, 15  ;;  %v1070_v54 = vld [vmem:[%s1328_s5 + $0x20] sm:$0xff]   ;;  %v1073_v59 = vld [vmem:[%s1328_s5 + $0x70] sm:$0xff]   ;;  %v1075_v61 = vld [vmem:[%s1328_s5 + $0x78] sm:$0xff]   ;;  %s928_s27 = sshll.u32 %s1332_s28, 3 }
   0xf   : > { %s274_s9 = scalar_lea.vmem %s1323_s0, %s926_s29  ;;  %v1220_v37 = vsel %vm317_vm2, 1.0, %v1093_v1  ;;  %v1074_v60 = vld [vmem:[%s1328_s5 + $0x30] sm:$0xff]   ;;  %v1076_v62 = vld [vmem:[%s1328_s5 + $0x38] sm:$0xff]   ;;  %v935_v63 = vld [vmem:[%s1327_s4] ss:$0 sm:$0xff]  ;;  %s280_s8 = scalar_lea.vmem %s1330_s7, %s928_s27 }
  0x10   : > { %v1048_v2 = vld [vmem:[%s274_s9] sm:$0xff]   ;;  %981 = vmatpush3.bf16.msra.mxu0 %v1064_v26  ;;  %v1078_v24 = vld [vmem:[%s1328_s5 + $0x88] sm:$0xff]   ;;  %v1079_v17 = vld [vmem:[%s1328_s5 + $0x90] sm:$0xff]  }
  0x11   : > { %1012 = vmatmul.mubr.msk.bf16.vlgmr.msra.gmra.mrb[0].mxu1 %vm418_vm1, %v1048_v2  ;;  %982 = vmatprep.subr.bf16.mxu0 %v1065_v29  ;;  %v1077_v21 = vld [vmem:[%s1328_s5 + $0x80] sm:$0xff]   ;;  %v1084_v29 = vld [vmem:[%s1328_s5 + $0xb8] sm:$0xff]  }
  0x12   : > { %572 = vmatpush1.bf16.msra.mxu1 %v1049_v3  ;;  %v1081_v26 = vld [vmem:[%s1328_s5 + $0xa0] sm:$0xff]  }
  0x13   : > { %573 = vmatprep.subr.bf16.mxu1 %v1095_v4 }
  0x14   : > { %983 = vmatpush3.bf16.msra.mxu0 %v1066_v34 }
  0x15   : > { %984 = vmatprep.subr.bf16.mxu0 %v1067_v39 }
  0x16   : > { %574 = vmatpush1.bf16.msra.mxu1 %v1050_v5 }
  0x17   : > { %575 = vmatprep.subr.bf16.mxu1 %v1095_v4 }
  0x18   : > { %985 = vmatpush3.bf16.msra.mxu0 %v1068_v44 }
  0x19   : > { %986 = vmatprep.subr.bf16.mxu0 %v1069_v49 }
  0x1a   : > { %576 = vmatpush1.bf16.msra.mxu1 %v1051_v6 }
  0x1b   : > { %577 = vmatprep.subr.bf16.mxu1 %v1095_v4 }
  0x1c   : > { %987 = vmatpush3.bf16.msra.mxu0 %v1070_v54 }
  0x1d   : > { %988 = vmatprep.subr.bf16.mxu0 %v1071_v57 }
  0x1e   : > { %578 = vmatpush1.bf16.msra.mxu1 %v1052_v7 }
  0x1f   : > { %579 = vmatprep.subr.bf16.mxu1 %v1095_v4 }
  0x20   : > { %989 = vmatpush3.bf16.msra.mxu0 %v1072_v58 }
  0x21   : > { %990 = vmatprep.subr.bf16.mxu0 %v1073_v59 }
  0x22   : > { %580 = vmatpush1.bf16.msra.mxu1 %v1053_v8 }
  0x23   : > { %581 = vmatprep.subr.bf16.mxu1 %v1095_v4 }
  0x24   : > { %991 = vmatpush3.bf16.msra.mxu0 %v1074_v60 }
  0x25   : > { %992 = vmatprep.subr.bf16.mxu0 %v1075_v61 }
  0x26   : > { %582 = vmatpush1.bf16.msra.mxu1 %v1054_v9 }
  0x27   : > { %583 = vmatprep.subr.bf16.mxu1 %v1095_v4 }
  0x28   : > { %993 = vmatpush3.bf16.msra.mxu0 %v1076_v62 }
  0x29   : > { %1015 = vmatprep.subr.bf16.mxu0 %v1093_v1 }
  0x2a   : > { %584 = vmatpush1.bf16.msra.mxu1 %v1055_v10 }
  0x2b   : > { %585 = vmatprep.subr.bf16.mxu1 %v1095_v4 }
  0x2e   : > { %586 = vmatpush1.bf16.msra.mxu1 %v1056_v11 }
  0x2f   : > { %587 = vmatprep.subr.bf16.mxu1 %v1095_v4 }
  0x32   : > { %588 = vmatpush1.bf16.msra.mxu1 %v1057_v12 }
  0x33   : > { %589 = vmatprep.subr.bf16.mxu1 %v1095_v4 }
  0x36   : > { %590 = vmatpush1.bf16.msra.mxu1 %v1058_v13 }
  0x37   : > { %591 = vmatprep.subr.bf16.mxu1 %v1095_v4 }
  0x3a   : > { %592 = vmatpush1.bf16.msra.mxu1 %v1059_v14 }
  0x3b   : > { %593 = vmatprep.subr.bf16.mxu1 %v1095_v4 }
  0x3e   : > { %594 = vmatpush1.bf16.msra.mxu1 %v1060_v15 }
  0xe4   : > { %v456_v25 = vpop.f32.mrb[0].mxu1 }
  0xe5   : > { %v457_v27 = vadd.f32 %v931_v22, %v456_v25  ;;  %v1013_v28 = vpop.f32.mrb[1].mxu1  ;;  %v1080_v25 = vld [vmem:[%s1328_s5 + $0x98] sm:$0xff]  }
  0xe6   : > { %v459_v30 = vpop.f32.mrb[2].mxu1  ;;  %v1083_v28 = vld [vmem:[%s1328_s5 + $0xb0] sm:$0xff]  }
  0xe7   : > { %v463_v31 = vmax.f32 %v457_v27, 0.0  ;;  %v460_v32 = vadd.f32 %v931_v22, %v459_v30  ;;  %v1014_v33 = vpop.f32.mrb[3].mxu1  ;;  %v1082_v27 = vld [vmem:[%s1328_s5 + $0xa8] sm:$0xff]  }
  0xe9   : > { %v464_v35 = vmax.f32 %v460_v32, 0.0  ;;  %v465_v36 = vrot.slane %v463_v31, 7  ;;  %v474_v40 = vrot.slane %v463_v31, 1 }
  0xeb   : > { %v466_v41 = vrot.slane %v464_v35, 7  ;;  %v475_v42 = vrot.slane %v464_v35, 1  ;;  %v473_v43 = vpack.c.bf16 %v464_v35, %v463_v31 }
  0xed   : > { %v478_v45 = vsel %vm476_vm4, %v475_v42, %v474_v40  ;;  %483 = vrot.lane.b32.xlu0 %v473_v43, %s1096_s10  ;;  %v477_v46 = vsel %vm476_vm4, %v474_v40, %v475_v42  ;;  %v468_v47 = vsel %vm467_vm5, %v465_v36, %v466_v41  ;;  %v469_v48 = vsel %vm467_vm5, %v466_v41, %v465_v36  ;;  %v949_v36 = vld [vmem:[%s1329_s6] ss:$0 sm:$0xff] }
  0xee   : > { %v480_v50 = vmul.f32 %v1220_v37, %v478_v45  ;;  %v470_v51 = vmul.f32 %v1223_v38, %v469_v48 }
  0xf0   : > { %v481_v52 = vpack.c.bf16 %v480_v50, %v477_v46  ;;  %v472_v53 = vpack.c.bf16 %v468_v47, %v470_v51 }
  0xf2   : > { %948 = vmatprep.mubr.msk.bf16.mxu1 %vm485_vm6, %v481_v52 }
 0x15f   : > { %v484_v55 = vpop.permute.xlu0 %483 }
 0x160   : > { %v488_v56 = vsel %vm485_vm6, %v472_v53, %v484_v55 }
 0x161   : > { %604 = vmatmul.mubr.bf16.vlgmr.msra.gmra.mrb[4].mxu1 %v488_v56 }
 0x234   : > { %v605_v0 = vpop.f32.mrb[4].mxu1 }
 0x235   : > { %v606_v2 = vadd.f32 %v935_v63, %v605_v0  ;;  %v607_v3 = vpop.f32.mrb[5].mxu1 }
 0x236   : > { %v608_v4 = vpop.f32.mrb[6].mxu1 }
 0x237   : > { %v612_v5 = vmax.f32 %v606_v2, 0.0  ;;  %v609_v6 = vadd.f32 %v935_v63, %v608_v4  ;;  %v610_v7 = vpop.f32.mrb[7].mxu1 }
 0x239   : > { %v613_v8 = vmax.f32 %v609_v6, 0.0  ;;  %v614_v9 = vrot.slane %v612_v5, 7  ;;  %v622_v10 = vrot.slane %v612_v5, 1 }
 0x23b   : > { %v615_v11 = vrot.slane %v613_v8, 7  ;;  %v623_v12 = vrot.slane %v613_v8, 1  ;;  %v621_v13 = vpack.c.bf16 %v613_v8, %v612_v5 }
 0x23d   : > { %v625_v14 = vsel %vm476_vm4, %v623_v12, %v622_v10  ;;  %811 = vmatprep.mubr.bf16.mxu0 %v621_v13  ;;  %v616_v15 = vsel %vm467_vm5, %v614_v9, %v615_v11  ;;  %v617_v16 = vsel %vm467_vm5, %v615_v11, %v614_v9  ;;  %v624_v18 = vsel %vm476_vm4, %v622_v10, %v623_v12 }
 0x23e   : > { %v618_v19 = vmul.f32 %v1223_v38, %v617_v16  ;;  %v627_v20 = vmul.f32 %v1220_v37, %v625_v14 }
 0x240   : > { %v620_v22 = vpack.c.bf16 %v616_v15, %v618_v19  ;;  %v628_v23 = vpack.c.bf16 %v627_v20, %v624_v18 }
 0x242   : > { %812 = vmatmul.mubr.bf16.vlgmr.msra.gmra.mrb[0].mxu0 %v620_v22 }
 0x243   : > { %1016 = vmatpush3.bf16.msra.mxu0 %v1077_v21  ;;  %1031 = vmatprep.mubr.msk.bf16.mxu0 %vm1094_vm0, %v1093_v1 }
 0x244   : > { %1017 = vmatprep.subr.bf16.mxu0 %v1093_v1 }
 0x247   : > { %1018 = vmatpush3.bf16.msra.mxu0 %v1078_v24 }
 0x248   : > { %1019 = vmatprep.subr.bf16.mxu0 %v1093_v1 }
 0x24b   : > { %1020 = vmatpush3.bf16.msra.mxu0 %v1079_v17 }
 0x24c   : > { %1021 = vmatprep.subr.bf16.mxu0 %v1093_v1 }
 0x24f   : > { %1022 = vmatpush3.bf16.msra.mxu0 %v1080_v25 }
 0x250   : > { %1023 = vmatprep.subr.bf16.mxu0 %v1093_v1 }
 0x253   : > { %1024 = vmatpush3.bf16.msra.mxu0 %v1081_v26 }
 0x254   : > { %1025 = vmatprep.subr.bf16.mxu0 %v1093_v1 }
 0x257   : > { %1026 = vmatpush3.bf16.msra.mxu0 %v1082_v27 }
 0x258   : > { %1027 = vmatprep.subr.bf16.mxu0 %v1093_v1 }
 0x25b   : > { %1028 = vmatpush3.bf16.msra.mxu0 %v1083_v28 }
 0x25c   : > { %1029 = vmatprep.subr.bf16.mxu0 %v1093_v1 }
 0x25f   : > { %1030 = vmatpush3.bf16.msra.mxu0 %v1084_v29 }
 0x262   : > { %1032 = vmatmul.mubr.bf16.vlgmr.msra.gmra.mrb[4].mxu0 %v628_v23 }
 0x315   : > { %v994_v30 = vpop.f32.mrb[0].mxu0 }
 0x316   : > { %v995_v31 = vpop.f32.mrb[1].mxu0 }
 0x317   : > { %v996_v32 = vadd.f32 %v995_v31, %v994_v30  ;;  %v997_v33 = vpop.f32.mrb[2].mxu0 }
 0x318   : > { %v998_v34 = vpop.f32.mrb[3].mxu0 }
 0x319   : > { %v999_v35 = vadd.f32 %v998_v34, %v997_v33  ;;  %v814_v37 = vadd.f32 %v996_v32, %v949_v36 }
 0x31b   : > { %v817_v40 = vadd.f32 %v999_v35, %v949_v36 }
 0x335   : > { %v854_v38 = vpop.f32.mrb[4].mxu0 }
 0x336   : > { %v855_v1 = vadd.f32 %v854_v38, %v814_v37  ;;  %v1033_v39 = vpop.f32.mrb[5].mxu0 }
 0x337   : > { %v857_v41 = vpop.f32.mrb[6].mxu0 }
 0x338   : > { %862 = vst.msk [vmem:[%s280_s8] sm:$0xff] %vm861_vm7, %v855_v1  ;;  %v858_v42 = vadd.f32 %v857_v41, %v817_v40  ;;  %v1034_v43 = vpop.f32.mrb[7].mxu0 }
 0x33a   : > { %863 = vst.msk [vmem:[%s280_s8 + $0x8] sm:$0xff] %vm861_vm7, %v858_v42 }
 0x33b PF: > { %s17_s24 = sadd.s32 1, %s1091_s24  }
 0x33c   : > { %p14_p4 = scmp.ge.s32.totalorder %s17_s24, 4  }
 0x33e   :  { %16 = sbr.rel (!%p14_p4) target bundleno = 1 (0x1), region = 78 }

</bundles_post_ra>
